<compile_context>
chip_gen: v6e
topology: v6e:2x2x1
jax: 0.10.0
libtpu: 0.0.40
codegen_flags: <defaults>
</compile_context>

<pallas_src>
import jax
import jax.numpy as jnp
from jax import lax
from jax.experimental import pallas as pl
from jax.experimental.pallas import tpu as pltpu

_UNROLL_LIMIT = 8  # beyond this, use a rolled fori_loop (serial chain => no ILP win)


def _make_matmult_mean_kernel(num_apps: int, has_bias: bool, batch: int, n: int,
                              compute_dtype):
    inv_count = 1.0 / float(batch * n)  # compile-time constant for the mean

    def step(out, wt, b):
        # Chain output is f32; feed MXU in the native compute dtype, accumulate f32.
        lhs = out if out.dtype == compute_dtype else out.astype(compute_dtype)
        out = jnp.dot(lhs, wt, preferred_element_type=jnp.float32)
        if b is not None:
            out = out + b                       # (B,N) + (1,N): free sublane broadcast
        return out

    def run_chain(x, wt, b):
        out = step(x, wt, b)                    # first application (always happens)
        remaining = num_apps - 1
        if remaining <= 0:
            return out
        if remaining <= _UNROLL_LIMIT:
            for _ in range(remaining):
                out = step(out, wt, b)
            return out
        return lax.fori_loop(0, remaining, lambda i, o: step(o, wt, b), out)

    if has_bias:
        def kernel(x_ref, w_ref, b_ref, o_ref):
            wt = jnp.transpose(w_ref[...])      # one-time transpose, hoisted off the chain
            b = b_ref[...]                      # (1, N)
            out = run_chain(x_ref[...], wt, b)
            o_ref[0, 0] = jnp.sum(out) * inv_count
        return kernel
    else:
        def kernel(x_ref, w_ref, o_ref):
            wt = jnp.transpose(w_ref[...])
            out = run_chain(x_ref[...], wt, None)
            o_ref[0, 0] = jnp.sum(out) * inv_count
        return kernel


def matmult_mean(x, weight, bias, *, loop_count: int, is_add_bias: bool):
    """x: (B, N), weight: (N_out, N_in) in nn.Linear layout, bias: (N,) or None.

    Returns the scalar (f32) mean of the chained Linear application, matching
    the PyTorch module: Linear is applied max(1, loop_count) times.
    """
    B, N = x.shape
    assert weight.shape == (N, N), "chained Linear requires a square weight (N_out == N_in)"
    has_bias = bool(is_add_bias) and bias is not None
    num_apps = max(1, int(loop_count))          # PyTorch applies Linear at least once

    compute_dtype = x.dtype
    # Keep operands in the input's native dtype (bf16 stays bf16 for the MXU);
    # only emit a cast if the dtype actually differs.
    w = weight if weight.dtype == compute_dtype else weight.astype(compute_dtype)

    kernel = _make_matmult_mean_kernel(num_apps, has_bias, B, N, compute_dtype)

    inputs = [x, w]
    in_specs = [
        pl.BlockSpec(memory_space=pltpu.VMEM),
        pl.BlockSpec(memory_space=pltpu.VMEM),
    ]
    if has_bias:
        b = bias if bias.dtype == compute_dtype else bias.astype(compute_dtype)
        inputs.append(b.reshape(1, N))
        in_specs.append(pl.BlockSpec(memory_space=pltpu.VMEM))

    out = pl.pallas_call(
        kernel,
        out_shape=jax.ShapeDtypeStruct((1, 1), jnp.float32),
        in_specs=in_specs,
        out_specs=pl.BlockSpec(memory_space=pltpu.SMEM),
    )(*inputs)
    return out[0, 0]


def _reference(x, weight, bias, loop_count, is_add_bias):
    """Pure-JAX reference mirroring the PyTorch module exactly."""
    out = x @ weight.T
    if is_add_bias and bias is not None:
        out = out + bias
    for _ in range(1, loop_count):
        out = out @ weight.T
        if is_add_bias and bias is not None:
            out = out + bias
    return jnp.mean(out)


if __name__ == "__main__":
    # Small, deterministic configuration consistent with the module:
    #   n = 32 features, batch = 8, bias enabled, 4 chained applications.
    n = 32
    batch = 8
    loop_count = 4

    key = jax.random.PRNGKey(0)
    kx, kw, kb = jax.random.split(key, 3)

    # Deterministic init mimicking nn.Linear's default U(-1/sqrt(n), 1/sqrt(n)).
    bound = 1.0 / jnp.sqrt(jnp.float32(n))
    x = jax.random.normal(kx, (batch, n), dtype=jnp.float32)
    weight = jax.random.uniform(kw, (n, n), minval=-bound, maxval=bound, dtype=jnp.float32)
    bias = jax.random.uniform(kb, (n,), minval=-bound, maxval=bound, dtype=jnp.float32)

    # 1) Standard config (bias, loop_count=4, unrolled chain).
    result = matmult_mean(x, weight, bias, loop_count=loop_count, is_add_bias=True)
    jax.block_until_ready(result)
    ref = _reference(x, weight, bias, loop_count, True)
    assert jnp.allclose(result, ref, rtol=1e-5, atol=1e-5), (result, ref)

    # 2) No-bias path (bias input dropped entirely).
    result_nb = matmult_mean(x, weight, None, loop_count=loop_count, is_add_bias=False)
    jax.block_until_ready(result_nb)
    ref_nb = _reference(x, weight, None, loop_count, False)
    assert jnp.allclose(result_nb, ref_nb, rtol=1e-5, atol=1e-5), (result_nb, ref_nb)

    # 3) Edge case loop_count=0: PyTorch still applies Linear once.
    result_0 = matmult_mean(x, weight, bias, loop_count=0, is_add_bias=True)
    jax.block_until_ready(result_0)
    ref_0 = _reference(x, weight, bias, 0, True)
    assert jnp.allclose(result_0, ref_0, rtol=1e-5, atol=1e-5), (result_0, ref_0)

    # 4) Long chain exercises the rolled fori_loop path (capped unroll).
    result_long = matmult_mean(x, weight, bias, loop_count=20, is_add_bias=True)
    jax.block_until_ready(result_long)
    ref_long = _reference(x, weight, bias, 20, True)
    assert jnp.allclose(result_long, ref_long, rtol=1e-4, atol=1e-5), (result_long, ref_long)

    print("KERNEL_OK")
</pallas_src>

<mosaic_0001>
module attributes {stable_mosaic.version = 11 : i64} {
  func.func @kernel(%arg0: memref<8x32xf32, #tpu.memory_space<vmem>>, %arg1: memref<32x32xf32, #tpu.memory_space<vmem>>, %arg2: memref<1x32xf32, #tpu.memory_space<vmem>>, %arg3: memref<1x1xf32, #tpu.memory_space<smem>>) attributes {dimension_semantics = [], scalar_prefetch = 0 : i64, scratch_operands = 0 : i64, tpu.core_type = #tpu.core_type<tc>} {
    %c0 = arith.constant 0 : index
    %c0_0 = arith.constant 0 : index
    %0 = vector.load %arg1[%c0, %c0_0] : memref<32x32xf32, #tpu.memory_space<vmem>>, vector<32x32xf32>
    %1 = tpu.transpose %0, [1, 0] : vector<32x32xf32> -> vector<32x32xf32>
    %c0_1 = arith.constant 0 : index
    %c0_2 = arith.constant 0 : index
    %2 = vector.load %arg2[%c0_1, %c0_2] : memref<1x32xf32, #tpu.memory_space<vmem>>, vector<1x32xf32>
    %c0_3 = arith.constant 0 : index
    %c0_4 = arith.constant 0 : index
    %3 = vector.load %arg0[%c0_3, %c0_4] : memref<8x32xf32, #tpu.memory_space<vmem>>, vector<8x32xf32>
    %cst = arith.constant dense<0.000000e+00> : vector<8x32xf32>
    %4 = tpu.matmul %3, %1, %cst {dimension_numbers = #tpu.dot_dimension_numbers<[1], [0], [0], [1], [0, 0, 1, 1], [], []>} : vector<8x32xf32>, vector<32x32xf32>, vector<8x32xf32> -> vector<8x32xf32>
    %5 = vector.broadcast %2 : vector<1x32xf32> to vector<8x32xf32>
    %6 = arith.addf %4, %5 : vector<8x32xf32>
    %cst_5 = arith.constant dense<0.000000e+00> : vector<8x32xf32>
    %7 = tpu.matmul %6, %1, %cst_5 {dimension_numbers = #tpu.dot_dimension_numbers<[1], [0], [0], [1], [0, 0, 1, 1], [], []>} : vector<8x32xf32>, vector<32x32xf32>, vector<8x32xf32> -> vector<8x32xf32>
    %8 = vector.broadcast %2 : vector<1x32xf32> to vector<8x32xf32>
    %9 = arith.addf %7, %8 : vector<8x32xf32>
    %cst_6 = arith.constant dense<0.000000e+00> : vector<8x32xf32>
    %10 = tpu.matmul %9, %1, %cst_6 {dimension_numbers = #tpu.dot_dimension_numbers<[1], [0], [0], [1], [0, 0, 1, 1], [], []>} : vector<8x32xf32>, vector<32x32xf32>, vector<8x32xf32> -> vector<8x32xf32>
    %11 = vector.broadcast %2 : vector<1x32xf32> to vector<8x32xf32>
    %12 = arith.addf %10, %11 : vector<8x32xf32>
    %cst_7 = arith.constant dense<0.000000e+00> : vector<8x32xf32>
    %13 = tpu.matmul %12, %1, %cst_7 {dimension_numbers = #tpu.dot_dimension_numbers<[1], [0], [0], [1], [0, 0, 1, 1], [], []>} : vector<8x32xf32>, vector<32x32xf32>, vector<8x32xf32> -> vector<8x32xf32>
    %14 = vector.broadcast %2 : vector<1x32xf32> to vector<8x32xf32>
    %15 = arith.addf %13, %14 : vector<8x32xf32>
    %16 = vector.shape_cast %15 : vector<8x32xf32> to vector<1x8x32xf32>
    %cst_8 = arith.constant dense<0.000000e+00> : vector<1xf32>
    %17 = vector.multi_reduction <add>, %16, %cst_8 [1, 2] : vector<1x8x32xf32> to vector<1xf32>
    %18 = vector.shape_cast %17 : vector<1xf32> to vector<1x1x1xf32>
    %19 = vector.extract %18[0, 0, 0] : f32 from vector<1x1x1xf32>
    %cst_9 = arith.constant 3.906250e-03 : f32
    %20 = arith.mulf %19, %cst_9 : f32
    %c0_10 = arith.constant 0 : index
    %c0_11 = arith.constant 0 : index
    %21 = memref.load %arg3[%c0_10, %c0_11] : memref<1x1xf32, #tpu.memory_space<smem>>
    memref.store %20, %arg3[%c0_10, %c0_11] : memref<1x1xf32, #tpu.memory_space<smem>>
    return
  }
}

</mosaic_0001>

<bundles_post_ra>
// kernel: tpu_custom_call.1
= control target key start
LH: loop header
LB: loop body
LE: loop exit
PB: predicated region body
PF: predicated region fallthrough
CT: control target
= control target key end

     0   :  { %8 = vsyncpa [#allocation3], 0  ;;  %s598_s0 = inlined_call_operand.hbm [shape: f32[8,32], index: 0, kind: input, shape index: {}]   ;;  %s599_s1 = inlined_call_operand.hbm [shape: f32[32,32], index: 1, kind: input, shape index: {}]   ;;  %s600_s2 = inlined_call_operand.vmem [shape: f32[1,32], index: 2, kind: input, shape index: {}]   ;;  %s601_s3 = inlined_call_operand.hbm [shape: f32[1,1], index: 3, kind: output, shape index: {}]  }
   0x1   :  { %9 = vsyncpa [#allocation6], 0 }
   0x2   :  { %10 = vsyncpa [#allocation4], 0  ;;  %s534_s12 = smov [#allocation2]   ;;  %s535_s14 = smov [#allocation5]  }
   0x3   :  { %s17_s13 = sshll.u32 %s534_s12, 4  ;;  %s26_s15 = sshll.u32 %s535_s14, 4  ;;  %s18_s13 = int_to_ptr.vmem [resolvable:$true] %s17_s13  ;;  %s27_s15 = int_to_ptr.vmem [resolvable:$true] %s26_s15 }
   0x4   :  { %s488_s16 = scalar_lea.vmem %s18_s13, 128  ;;  %p493_p1 = scmp.lt.s32.totalorder %s18_s13, %s18_s13 }
   0x5   :  { %p489_p0 = scmp.ne.s32.totalorder %s18_s13, %s488_s16  ;;  %p494_p2 = scmp.lt.s32.totalorder %s488_s16, %s488_s16 }
   0x7   :  { %p495_p3 = por %p494_p2, %p493_p1 }
   0x9   :  { %p496_p4 = pnand %p495_p3, %p489_p0 }
   0xb   :  { %499 = shalt.err (!%p496_p4)
}
   0xc   :  { %20 = dma.hbm_to_vmem [thread:$0]  %s598_s0, 128, %s18_s13, [#allocation3]  }
   0xd   :  { %s508_s19 = scalar_lea.vmem %s27_s15, 512  ;;  %p513_p6 = scmp.lt.s32.totalorder %s27_s15, %s27_s15 }
   0xe   :  { %p509_p5 = scmp.ne.s32.totalorder %s27_s15, %s508_s19  ;;  %p514_p7 = scmp.lt.s32.totalorder %s508_s19, %s508_s19 }
  0x10   :  { %p515_p8 = por %p514_p7, %p513_p6 }
  0x12   :  { %p516_p9 = pnand %p515_p8, %p509_p5 }
  0x14   :  { %519 = shalt.err (!%p516_p9)
}
  0x15   :  { %s536_s20 = smov 128   ;;  %s537_s21 = smov 8  }
  0x16   :  { %32 = dma.hbm_to_vmem [thread:$0]  %s599_s1, 512, %s27_s15, [#allocation6], %s536_s20, %s536_s20, %s537_s21  }
  0x17   :  { %528 = dma.done.wait [#allocation3], 128  }
  0x18   :  { %529 = vsyncadd [#allocation3], 4294967168 }
  0x19   :  { %530 = dma.done.wait [#allocation6], 512  }
  0x1a   :  { %531 = vsyncadd [#allocation6], 4294966784  ;;  %v538_v0 = vmov 0.0   ;;  %vm539_vm0 = vmmov 0   ;;  %vm53_vm1 = vcmask 261120   ;;  %v44_v1 = vld [vmem:[#allocation5 + $0x18] sm:$0xff] }
  0x1b   :  { %427 = vmatprep.subr.mxu0 %v538_v0  ;;  %435 = vmatprep.mubr.msk.f32.mxu0 %vm539_vm0, %v538_v0  ;;  %v43_v2 = vld [vmem:[#allocation5 + $0x10] sm:$0xff]  ;;  %v42_v3 = vld [vmem:[#allocation5 + $0x8] sm:$0xff]  ;;  %v41_v4 = vld [vmem:[#allocation5] sm:$0xff]  ;;  %s540_s25 = smov [#allocation7]  }
  0x1c   :  { %438 = vmatprep.subr.mxu1 %v538_v0  ;;  %446 = vmatprep.mubr.msk.f32.mxu1 %vm539_vm0, %v538_v0  ;;  %v46_v5 = vld [vmem:[#allocation2] sm:$0xff] }
  0x1d   :  { %428 = vmatpush3.xpose.msk.msra.mxu0 %vm53_vm1, %v44_v1  ;;  %439 = vmatpush3.xpose.msk.msra.mxu1 %vm53_vm1, %v44_v1  ;;  %v386_v6 = vld [vmem:[%s600_s2] ss:$0 sm:$0xff] }
  0x1e   :  { %429 = vmatprep.subr.mxu0 %v538_v0  ;;  %440 = vmatprep.subr.mxu1 %v538_v0 }
  0x21   :  { %430 = vmatpush3.xpose.msk.msra.mxu0 %vm53_vm1, %v43_v2  ;;  %441 = vmatpush3.xpose.msk.msra.mxu1 %vm53_vm1, %v43_v2 }
  0x22   :  { %431 = vmatprep.subr.mxu0 %v538_v0  ;;  %442 = vmatprep.subr.mxu1 %v538_v0 }
  0x25   :  { %432 = vmatpush3.xpose.msk.msra.mxu0 %vm53_vm1, %v42_v3  ;;  %443 = vmatpush3.xpose.msk.msra.mxu1 %vm53_vm1, %v42_v3 }
  0x26   :  { %433 = vmatprep.subr.mxu0 %v538_v0  ;;  %444 = vmatprep.subr.mxu1 %v538_v0 }
  0x29   :  { %434 = vmatpush3.xpose.msk.msra.mxu0 %vm53_vm1, %v41_v4  ;;  %445 = vmatpush3.xpose.msk.msra.mxu1 %vm53_vm1, %v41_v4 }
  0x2a   :  { %449 = vmatprep.subr.mxu0 %v538_v0  ;;  %460 = vmatprep.subr.mxu1 %v538_v0 }
  0x2c   :  { %436 = vmatmul.mubr.msk.f32.vlgmr.msra.gmra.mxu0 %vm53_vm1, %v46_v5 }
  0x2d   :  { %450 = vmatpush3.xpose.msk.msra.mxu0 %vm53_vm1, %v44_v1  ;;  %457 = vmatprep.mubr.msk.f32.mxu0 %vm539_vm0, %v538_v0 }
  0x2e   :  { %451 = vmatprep.subr.mxu0 %v538_v0 }
  0x31   :  { %452 = vmatpush3.xpose.msk.msra.mxu0 %vm53_vm1, %v43_v2 }
  0x32   :  { %453 = vmatprep.subr.mxu0 %v538_v0 }
  0x35   :  { %454 = vmatpush3.xpose.msk.msra.mxu0 %vm53_vm1, %v42_v3 }
  0x36   :  { %455 = vmatprep.subr.mxu0 %v538_v0 }
  0x39   :  { %456 = vmatpush3.xpose.msk.msra.mxu0 %vm53_vm1, %v41_v4 }
  0xec   :  { %v135_v7 = vpop.f32.mrf.mxu0 }
  0xed   :  { %v136_v8 = vadd.f32 %v386_v6, %v135_v7 }
  0xee   :  { %v437_v9 = vpop.f32.mrf.mxu0 }
  0xef   :  { %447 = vmatmul.mubr.msk.f32.vlgmr.msra.gmra.mxu1 %vm53_vm1, %v136_v8 }
  0xf0   :  { %461 = vmatpush3.xpose.msk.msra.mxu1 %vm53_vm1, %v44_v1  ;;  %468 = vmatprep.mubr.msk.f32.mxu1 %vm539_vm0, %v538_v0 }
  0xf1   :  { %462 = vmatprep.subr.mxu1 %v538_v0 }
  0xf4   :  { %463 = vmatpush3.xpose.msk.msra.mxu1 %vm53_vm1, %v43_v2 }
  0xf5   :  { %464 = vmatprep.subr.mxu1 %v538_v0 }
  0xf8   :  { %465 = vmatpush3.xpose.msk.msra.mxu1 %vm53_vm1, %v42_v3 }
  0xf9   :  { %466 = vmatprep.subr.mxu1 %v538_v0 }
  0xfc   :  { %467 = vmatpush3.xpose.msk.msra.mxu1 %vm53_vm1, %v41_v4 }
 0x1af   :  { %v208_v10 = vpop.f32.mrf.mxu1 }
 0x1b0   :  { %v209_v11 = vadd.f32 %v386_v6, %v208_v10 }
 0x1b1   :  { %v448_v12 = vpop.f32.mrf.mxu1 }
 0x1b2   :  { %458 = vmatmul.mubr.msk.f32.vlgmr.msra.gmra.mxu0 %vm53_vm1, %v209_v11 }
 0x272   :  { %v281_v13 = vpop.f32.mrf.mxu0 }
 0x273   :  { %v282_v14 = vadd.f32 %v386_v6, %v281_v13 }
 0x274   :  { %v459_v15 = vpop.f32.mrf.mxu0 }
 0x275   :  { %469 = vmatmul.mubr.msk.f32.vlgmr.msra.gmra.mxu1 %vm53_vm1, %v282_v14 }
 0x335   :  { %v354_v16 = vpop.f32.mrf.mxu1 }
 0x336   :  { %v355_v17 = vadd.f32 %v386_v6, %v354_v16 }
 0x337   :  { %v470_v18 = vpop.f32.mrf.mxu1 }
 0x338   :  { %v358_v19 = vsel %vm53_vm1, %v355_v17, 0.0 }
 0x339   :  { %359 = vadd.xlane.f32.xlu0 %v358_v19 }
 0x3c2   :  { %v360_v20 = vpop.xlane.xlu0 %359 }
 0x3c3   :  { %v361_v21 = vrot.slane %v360_v20, 4 }
 0x3c5   :  { %v362_v22 = vadd.f32 %v361_v21, %v360_v20 }
 0x3c7   :  { %v363_v23 = vrot.slane %v362_v22, 2 }
 0x3c9   :  { %v364_v24 = vadd.f32 %v363_v23, %v362_v22 }
 0x3cb   :  { %v365_v25 = vrot.slane %v364_v24, 1 }
 0x3cd   :  { %v366_v26 = vadd.f32 %v365_v25, %v364_v24 }
 0x3cf   :  { %471 = vpush %v366_v26 }
 0x400   :  { %s472_s2 = spop %471 }
 0x401   :  { %s368_s24 = smul.f32 0.00390625, %s472_s2 }
 0x403   :  { %370 = sst [smem:[#allocation7]] %s368_s24 }
 0x404   :  { %378 = dma.smem_to_hbm %s540_s25, 16, %s601_s3, [#allocation4]  }
 0x405   :  { %532 = dma.done.wait [#allocation4], 16  }
 0x406   :  { %533 = vsyncadd [#allocation4], 4294967280 }
 0x407   :  { %382 = sfence }
 0x408   :  { %383 = vsyncpa [#allocation3], 1 }
 0x409   :  { %384 = vsyncpa [#allocation6], 1 }
 0x40a   :  { %385 = vsyncpa [#allocation4], 1 }

</bundles_post_ra>
